<compile_context>
chip_gen: v7x
topology: tpu7x:2x2x1
jax: 0.10.0
libtpu: 0.0.40
codegen_flags: <defaults>
</compile_context>

<pallas_src>
import functools

import jax
import jax.numpy as jnp
from jax import lax
from jax.experimental import pallas as pl
from jax.experimental.pallas import tpu as pltpu


def _focal_loss_kernel(x_ref, t_ref, o_ref, *, gamma, alpha, hw_valid):
    """One block: logits (bn, C, thw), targets (bn, 1, thw) -> partial sum."""
    x = x_ref[...].astype(jnp.float32)            # (bn, C, thw)
    t = t_ref[...]                                # (bn, 1, thw) int32
    bn, C, thw = x.shape

    # log_softmax over the (short, sublane) class axis.
    m = jnp.max(x, axis=1, keepdims=True)                         # (bn,1,thw)
    z = x - m                                                     # (bn,C,thw)
    lse = jnp.log(jnp.sum(jnp.exp(z), axis=1, keepdims=True))     # (bn,1,thw)

    # Gather the target-class shifted logit via a class-axis select+reduce.
    cls = lax.broadcasted_iota(jnp.int32, (1, C, 1), 1)           # (1,C,1)
    hit = cls == t                                                # (bn,C,thw)
    zt = jnp.sum(jnp.where(hit, z, 0.0), axis=1, keepdims=True)   # (bn,1,thw)
    logpt = zt - lse                                              # (bn,1,thw)
    pt = jnp.exp(logpt)                                           # before alpha

    # alpha weighting (compile-time constants; skipped entirely when None).
    if alpha is not None:
        at = jnp.zeros_like(logpt)
        for c, a_c in enumerate(alpha):
            at = jnp.where(t == c, jnp.float32(a_c), at)
        logpt = logpt * at

    # focal modulation: -(1 - pt)^gamma * logpt, integer gamma on the VPU.
    g = float(gamma)
    if g == 0.0:
        loss = -logpt
    else:
        omp = 1.0 - pt
        if g.is_integer() and g > 0:
            f = omp
            for _ in range(int(g) - 1):
                f = f * omp
        else:
            f = omp ** jnp.float32(g)
        loss = -f * logpt

    # Mask the ragged tail of the H*W axis (last block may read OOB garbage).
    if hw_valid is not None:
        col = (pl.program_id(1) * thw
               + lax.broadcasted_iota(jnp.int32, (1, 1, thw), 2))
        loss = jnp.where(col < hw_valid, loss, 0.0)

    # One partial sum per grid step; final reduction happens in the wrapper.
    o_ref[...] = jnp.sum(loss).reshape(1, 1, 1, 1)


def focal_loss(logits_nchw, target_nhw, *, gamma=0.0, alpha=None,
               size_average=True, block_bytes=2 * 1024 * 1024):
    """Pallas implementation of FocalLoss.forward for NCHW logits."""
    N, C, H, W = logits_nchw.shape
    HW = H * W

    # Free views only — no transpose, no pad, no host-side upcast.
    x3 = logits_nchw.reshape(N, C, HW)
    t3 = target_nhw.reshape(N, 1, HW).astype(jnp.int32)

    # alpha is module config -> bake as compile-time constants.
    if alpha is None:
        alpha_t = None
    elif isinstance(alpha, (float, int)) and not isinstance(alpha, bool):
        if C != 2:
            # PyTorch builds a length-2 [alpha, 1-alpha] table; any class >= 2
            # would be an out-of-range gather there, so reject instead of
            # silently zero-weighting classes.
            raise ValueError("scalar alpha requires a 2-class problem (C == 2)")
        alpha_t = (float(alpha), 1.0 - float(alpha))
    else:
        alpha_t = tuple(float(a) for a in alpha)
        if len(alpha_t) < C:
            raise ValueError("alpha must provide a weight for every class")
        alpha_t = alpha_t[:C]

    # --- tile selection: big lane-dense blocks under a ~block_bytes budget.
    LANE = 128
    itemsize = jnp.dtype(x3.dtype).itemsize
    plane_bytes = C * HW * itemsize
    if plane_bytes <= block_bytes:
        # Whole (C, HW) planes fit: batch several N-planes per block.
        thw = HW
        grid_j = 1
        bn = max(1, min(N, block_bytes // plane_bytes))
        while N % bn:          # keep bn a divisor of N -> no N masking needed
            bn -= 1
    else:
        # Split H*W into 128-aligned chunks.
        bn = 1
        thw = max(LANE, (block_bytes // (C * itemsize)) // LANE * LANE)
        if thw >= HW:
            thw = HW
            grid_j = 1
        else:
            grid_j = pl.cdiv(HW, thw)
    grid_n = N // bn
    hw_valid = HW if (HW % thw) else None   # mask only when the tail is ragged

    kernel = functools.partial(
        _focal_loss_kernel, gamma=float(gamma), alpha=alpha_t,
        hw_valid=hw_valid)

    partials = pl.pallas_call(
        kernel,
        out_shape=jax.ShapeDtypeStruct((grid_n, grid_j, 1, 1), jnp.float32),
        grid_spec=pltpu.PrefetchScalarGridSpec(
            num_scalar_prefetch=0,
            grid=(grid_n, grid_j),
            in_specs=[
                pl.BlockSpec((bn, C, thw), lambda nb, j: (nb, 0, j)),  # logits
                pl.BlockSpec((bn, 1, thw), lambda nb, j: (nb, 0, j)),  # targets
            ],
            out_specs=pl.BlockSpec((1, 1, 1, 1),
                                   lambda nb, j: (nb, j, 0, 0)),       # partials
        ),
        compiler_params=pltpu.CompilerParams(
            dimension_semantics=("parallel", "parallel"),
            vmem_limit_bytes=32 * 1024 * 1024),
    )(x3, t3)

    total = jnp.sum(partials)               # tiny (grid_n*grid_j) reduction
    if size_average:
        total = total / jnp.float32(N * HW)
    return total


def _focal_loss_ref(logits_nchw, target_nhw, *, gamma, alpha, size_average):
    """Pure-JAX reference mirroring the PyTorch module."""
    N, C, H, W = logits_nchw.shape
    x = logits_nchw.reshape(N, C, H * W).transpose(0, 2, 1).reshape(-1, C)
    t = target_nhw.reshape(-1).astype(jnp.int32)
    logp = jax.nn.log_softmax(x, axis=-1)
    logpt = jnp.take_along_axis(logp, t[:, None], axis=1)[:, 0]
    pt = jnp.exp(logpt)
    if alpha is not None:
        a = jnp.asarray(alpha, jnp.float32)[t]
        logpt = logpt * a
    loss = -((1.0 - pt) ** gamma) * logpt if gamma != 0 else -logpt
    return loss.mean() if size_average else loss.sum()


if __name__ == "__main__":
    key = jax.random.PRNGKey(0)
    k1, k2 = jax.random.split(key)

    N, C, H, W = 2, 4, 8, 8
    logits = jax.random.normal(k1, (N, C, H, W), jnp.float32)
    target = jax.random.randint(k2, (N, H, W), 0, C, jnp.int32)

    # Config 1: gamma=2, per-class alpha, mean reduction.
    gamma, alpha, size_average = 2.0, [0.1, 0.2, 0.3, 0.4], True
    out1 = jax.block_until_ready(
        focal_loss(logits, target, gamma=gamma, alpha=alpha,
                   size_average=size_average))
    ref1 = _focal_loss_ref(logits, target, gamma=gamma, alpha=alpha,
                           size_average=size_average)
    assert jnp.allclose(out1, ref1, rtol=1e-5, atol=1e-5), (out1, ref1)

    # Config 2: gamma=0, no alpha, sum reduction.
    out2 = jax.block_until_ready(
        focal_loss(logits, target, gamma=0.0, alpha=None, size_average=False))
    ref2 = _focal_loss_ref(logits, target, gamma=0.0, alpha=None,
                           size_average=False)
    assert jnp.allclose(out2, ref2, rtol=1e-5, atol=1e-5), (out2, ref2)

    print("KERNEL_OK")
</pallas_src>

<mosaic_0001>
module attributes {stable_mosaic.version = 11 : i64} {
  func.func @_focal_loss_kernel(%arg0: i32, %arg1: i32, %arg2: memref<2x4x64xf32, #tpu.memory_space<vmem>>, %arg3: memref<2x1x64xi32, #tpu.memory_space<vmem>>, %arg4: memref<1x1x1x1xf32, #tpu.memory_space<vmem>>) attributes {dimension_semantics = [#tpu.dimension_semantics<parallel>, #tpu.dimension_semantics<parallel>], iteration_bounds = array<i64: 1, 1>, scalar_prefetch = 0 : i64, scratch_operands = 0 : i64, tpu.core_type = #tpu.core_type<tc>, window_params = [{transform_indices = @transform_0, window_bounds = array<i64: 2, 4, 64>}, {transform_indices = @transform_1, window_bounds = array<i64: 2, 1, 64>}, {transform_indices = @transform_2, window_bounds = array<i64: 1, 1, 1, 1>}]} {
    %c0 = arith.constant 0 : index
    %c0_0 = arith.constant 0 : index
    %c0_1 = arith.constant 0 : index
    %0 = vector.load %arg2[%c0, %c0_0, %c0_1] : memref<2x4x64xf32, #tpu.memory_space<vmem>>, vector<2x4x64xf32>
    %c0_2 = arith.constant 0 : index
    %c0_3 = arith.constant 0 : index
    %c0_4 = arith.constant 0 : index
    %1 = vector.load %arg3[%c0_2, %c0_3, %c0_4] : memref<2x1x64xi32, #tpu.memory_space<vmem>>, vector<2x1x64xi32>
    %cst = arith.constant dense<0xFF800000> : vector<2x64xf32>
    %2 = vector.multi_reduction <maximumf>, %0, %cst [1] : vector<2x4x64xf32> to vector<2x64xf32>
    %3 = vector.shape_cast %2 : vector<2x64xf32> to vector<2x1x64xf32>
    %4 = vector.broadcast %3 : vector<2x1x64xf32> to vector<2x4x64xf32>
    %5 = arith.subf %0, %4 : vector<2x4x64xf32>
    %6 = math.exp %5 : vector<2x4x64xf32>
    %cst_5 = arith.constant dense<0.000000e+00> : vector<2x64xf32>
    %7 = vector.multi_reduction <add>, %6, %cst_5 [1] : vector<2x4x64xf32> to vector<2x64xf32>
    %8 = vector.shape_cast %7 : vector<2x64xf32> to vector<2x1x64xf32>
    %9 = math.log %8 : vector<2x1x64xf32>
    %10 = tpu.iota {dimensions = array<i32: 1>} : vector<1x4x1xi32>
    %11 = vector.broadcast %10 : vector<1x4x1xi32> to vector<2x4x64xi32>
    %12 = vector.broadcast %1 : vector<2x1x64xi32> to vector<2x4x64xi32>
    %13 = arith.cmpi eq, %11, %12 : vector<2x4x64xi32>
    %cst_6 = arith.constant 0.000000e+00 : f32
    %14 = vector.broadcast %cst_6 : f32 to vector<2x4x64xf32>
    %15 = arith.select %13, %5, %14 : vector<2x4x64xi1>, vector<2x4x64xf32>
    %cst_7 = arith.constant dense<0.000000e+00> : vector<2x64xf32>
    %16 = vector.multi_reduction <add>, %15, %cst_7 [1] : vector<2x4x64xf32> to vector<2x64xf32>
    %17 = vector.shape_cast %16 : vector<2x64xf32> to vector<2x1x64xf32>
    %18 = arith.subf %17, %9 : vector<2x1x64xf32>
    %19 = math.exp %18 : vector<2x1x64xf32>
    %cst_8 = arith.constant 0.000000e+00 : f32
    %20 = vector.broadcast %cst_8 : f32 to vector<2x1x64xf32>
    %c0_i32 = arith.constant 0 : i32
    %21 = vector.broadcast %c0_i32 : i32 to vector<2x1x64xi32>
    %22 = arith.cmpi eq, %1, %21 : vector<2x1x64xi32>
    %cst_9 = arith.constant 1.000000e-01 : f32
    %23 = vector.broadcast %cst_9 : f32 to vector<2x1x64xf32>
    %24 = arith.select %22, %23, %20 : vector<2x1x64xi1>, vector<2x1x64xf32>
    %c1_i32 = arith.constant 1 : i32
    %25 = vector.broadcast %c1_i32 : i32 to vector<2x1x64xi32>
    %26 = arith.cmpi eq, %1, %25 : vector<2x1x64xi32>
    %cst_10 = arith.constant 2.000000e-01 : f32
    %27 = vector.broadcast %cst_10 : f32 to vector<2x1x64xf32>
    %28 = arith.select %26, %27, %24 : vector<2x1x64xi1>, vector<2x1x64xf32>
    %c2_i32 = arith.constant 2 : i32
    %29 = vector.broadcast %c2_i32 : i32 to vector<2x1x64xi32>
    %30 = arith.cmpi eq, %1, %29 : vector<2x1x64xi32>
    %cst_11 = arith.constant 3.000000e-01 : f32
    %31 = vector.broadcast %cst_11 : f32 to vector<2x1x64xf32>
    %32 = arith.select %30, %31, %28 : vector<2x1x64xi1>, vector<2x1x64xf32>
    %c3_i32 = arith.constant 3 : i32
    %33 = vector.broadcast %c3_i32 : i32 to vector<2x1x64xi32>
    %34 = arith.cmpi eq, %1, %33 : vector<2x1x64xi32>
    %cst_12 = arith.constant 4.000000e-01 : f32
    %35 = vector.broadcast %cst_12 : f32 to vector<2x1x64xf32>
    %36 = arith.select %34, %35, %32 : vector<2x1x64xi1>, vector<2x1x64xf32>
    %37 = arith.mulf %18, %36 : vector<2x1x64xf32>
    %cst_13 = arith.constant 1.000000e+00 : f32
    %38 = vector.broadcast %cst_13 : f32 to vector<2x1x64xf32>
    %39 = arith.subf %38, %19 : vector<2x1x64xf32>
    %40 = arith.mulf %39, %39 : vector<2x1x64xf32>
    %cst_14 = arith.constant 0.000000e+00 : f32
    %41 = vector.broadcast %cst_14 : f32 to vector<2x1x64xf32>
    %42 = arith.subf %41, %40 : vector<2x1x64xf32>
    %43 = arith.mulf %42, %37 : vector<2x1x64xf32>
    %44 = vector.shape_cast %43 : vector<2x1x64xf32> to vector<1x2x1x64xf32>
    %cst_15 = arith.constant dense<0.000000e+00> : vector<1xf32>
    %45 = vector.multi_reduction <add>, %44, %cst_15 [1, 2, 3] : vector<1x2x1x64xf32> to vector<1xf32>
    %46 = vector.shape_cast %45 : vector<1xf32> to vector<1x1x1x1xf32>
    %47 = vector.extract %46[0, 0, 0, 0] : f32 from vector<1x1x1x1xf32>
    %48 = vector.broadcast %47 : f32 to vector<1x1x1x1xf32>
    %c0_16 = arith.constant 0 : index
    %c0_17 = arith.constant 0 : index
    %c0_18 = arith.constant 0 : index
    %c0_19 = arith.constant 0 : index
    %49 = vector.load %arg4[%c0_16, %c0_17, %c0_18, %c0_19] : memref<1x1x1x1xf32, #tpu.memory_space<vmem>>, vector<1x1x1x1xf32>
    tpu.vector_store %arg4[%c0_16, %c0_17, %c0_18, %c0_19], %48 {strides = array<i32>} : memref<1x1x1x1xf32, #tpu.memory_space<vmem>>, vector<1x1x1x1xf32>,
    return
  }
  func.func @transform_0(%arg0: i32, %arg1: i32) -> (i32, i32, i32) {
    %c0_i32 = arith.constant 0 : i32
    %c0_i32_0 = arith.constant 0 : i32
    return %arg0, %c0_i32, %arg1 : i32, i32, i32
  }
  func.func @transform_1(%arg0: i32, %arg1: i32) -> (i32, i32, i32) {
    %c0_i32 = arith.constant 0 : i32
    %c0_i32_0 = arith.constant 0 : i32
    return %arg0, %c0_i32, %arg1 : i32, i32, i32
  }
  func.func @transform_2(%arg0: i32, %arg1: i32) -> (i32, i32, i32, i32) {
    %c0_i32 = arith.constant 0 : i32
    %c0_i32_0 = arith.constant 0 : i32
    %c0_i32_1 = arith.constant 0 : i32
    return %arg0, %arg1, %c0_i32, %c0_i32_0 : i32, i32, i32, i32
  }
}

</mosaic_0001>

<bundles_post_ra>
// kernel: tpu_custom_call.1
= control target key start
LH: loop header
LB: loop body
LE: loop exit
PB: predicated region body
PF: predicated region fallthrough
CT: control target
= control target key end

     0   :  { %7 = vsyncpa [#allocation3], 0  ;;  %s297_s0 = inlined_call_operand.hbm [shape: f32[2,4,64], index: 0, kind: input, shape index: {}]   ;;  %s298_s1 = inlined_call_operand.vmem [shape: s32[2,1,64], index: 1, kind: input, shape index: {}]   ;;  %s299_s2 = inlined_call_operand.hbm [shape: f32[1,1,1,1], index: 2, kind: output, shape index: {}]  }
   0x1   :  { %8 = vsyncpa [#allocation4], 0  ;;  %s227_s9 = smov [#allocation2]   ;;  %s179_s13 = scalar_lea.hbm %s297_s0, 128 }
   0x2   :  { %s14_s10 = sshll.u32 %s227_s9, 4  ;;  %p180_p0 = scmp.ne.s32.totalorder %s297_s0, %s179_s13  ;;  %s15_s10 = int_to_ptr.vmem [resolvable:$true] %s14_s10 }
   0x3   :  { %p183_p1 = scmp.lt.u32.totalorder %s179_s13, %s297_s0 }
   0x5   :  { %p185_p2 = pnand %p183_p1, %p180_p0 }
   0x7   :  { %188 = shalt.err (!%p185_p2)
}
   0x8   :  { %s189_s18 = scalar_lea.vmem %s15_s10, 128  ;;  %p194_p4 = scmp.lt.s32.totalorder %s15_s10, %s15_s10 }
   0x9   :  { %p190_p3 = scmp.ne.s32.totalorder %s15_s10, %s189_s18  ;;  %p195_p5 = scmp.lt.s32.totalorder %s189_s18, %s189_s18 }
   0xb   :  { %p196_p6 = por %p195_p5, %p194_p4 }
   0xd   :  { %p197_p7 = pnand %p196_p6, %p190_p3 }
   0xf   :  { %200 = shalt.err (!%p197_p7)
}
  0x10   :  { %s228_s19 = smov 64   ;;  %s229_s20 = smov 4  }
  0x11   :  { %20 = dma.hbm_to_vmem [thread:$0]  %s297_s0, 128, %s15_s10, [#allocation3], %s228_s19, %s228_s19, %s229_s20  }
  0x12   :  { %223 = dma.done.wait [#allocation3], 128  }
  0x13   :  { %224 = vsyncadd [#allocation3], 4294967168  ;;  %vm30_vm0 = vcmask 519168   ;;  %v26_v0 = vld [vmem:[#allocation2] sm:$0xf]  ;;  %v69_v10 = vlaneseq  ;;  %vm129_vm11 = vcmask 516096  }
  0x14   :  { %v27_v1 = vld [vmem:[#allocation2 + $0x4] sm:$0xf]  ;;  %v31_v2 = vsel %vm30_vm0, %v26_v0, -inf  ;;  %v264_v21 = vld [vmem:[%s298_s1] sm:$0x1]  ;;  %vm143_vm12 = vcmask 0  }
  0x15   :  { %v38_v3 = vsel %vm30_vm0, %v27_v1, -inf  ;;  %v32_v4 = vrot.slane %v31_v2, 4  ;;  %v70_v15 = vshrl.u32 %v69_v10, 7  ;;  %v269_v22 = vld [vmem:[%s298_s1 + $0x1] sm:$0x1]  ;;  %vm103_vm3 = vcmp.eq.s32.totalorder %v264_v21, 0 }
  0x16   :  { %v39_v5 = vrot.slane %v38_v3, 4  ;;  %vm104_vm4 = vcmp.eq.s32.totalorder %v269_v22, 0  ;;  %vm107_vm5 = vcmp.eq.s32.totalorder %v264_v21, 1  ;;  %vm108_vm6 = vcmp.eq.s32.totalorder %v269_v22, 1  ;;  %s231_s1 = smov [#allocation5]  }
  0x17   :  { %v33_v6 = vmax.f32 %v31_v2, %v32_v4  ;;  %v73_v20 = vsub.s32 0, %v70_v15  ;;  %vm111_vm7 = vcmp.eq.s32.totalorder %v264_v21, 2  ;;  %vm112_vm8 = vcmp.eq.s32.totalorder %v269_v22, 2  ;;  %s151_s26 = sshll.u32 %s231_s1, 4  ;;  %s152_s26 = int_to_ptr.vmem [resolvable:$true] %s151_s26 }
  0x18   :  { %v40_v7 = vmax.f32 %v38_v3, %v39_v5  ;;  %v230_v3 = vmov 0.0   ;;  %vm115_vm9 = vcmp.eq.s32.totalorder %v264_v21, 3  ;;  %vm116_vm10 = vcmp.eq.s32.totalorder %v269_v22, 3  ;;  %s201_s28 = scalar_lea.vmem %s152_s26, 16  ;;  %s205_s29 = scalar_lea.vmem %s152_s26, 32 }
  0x19   :  { %v34_v8 = vrot.slane %v33_v6, 2  ;;  %v74_v25 = vrot.slane %v264_v21, %v73_v20  ;;  %v78_v26 = vrot.slane %v269_v22, %v73_v20  ;;  %v105_v4 = vsel %vm103_vm3, 0.1, %v230_v3  ;;  %p202_p8 = scmp.ne.s32.totalorder %s152_s26, %s201_s28  ;;  %p206_p9 = scmp.lt.s32.totalorder %s152_s26, %s152_s26 }
  0x1a   :  { %v41_v9 = vrot.slane %v40_v7, 2  ;;  %v106_v5 = vsel %vm104_vm4, 0.1, %v230_v3  ;;  %p207_p10 = scmp.lt.s32.totalorder %s205_s29, %s201_s28 }
  0x1b   :  { %v35_v11 = vmax.f32 %v33_v6, %v34_v8  ;;  %vm79_vm1 = vcmp.eq.s32.totalorder %v70_v15, %v74_v25  ;;  %vm80_vm2 = vcmp.eq.s32.totalorder %v70_v15, %v78_v26  ;;  %v109_v6 = vsel %vm107_vm5, 0.2, %v105_v4 }
  0x1c   :  { %v42_v12 = vmax.f32 %v40_v7, %v41_v9  ;;  %v110_v7 = vsel %vm108_vm6, 0.2, %v106_v5  ;;  %v113_v8 = vsel %vm111_vm7, 0.3, %v109_v6  ;;  %p208_p11 = por %p207_p10, %p206_p9 }
  0x1d   :  { %v36_v13 = vrot.slane %v35_v11, 1  ;;  %v114_v9 = vsel %vm112_vm8, 0.3, %v110_v7 }
  0x1e   :  { %v43_v14 = vrot.slane %v42_v12, 1  ;;  %p209_p12 = pnand %p208_p11, %p202_p8 }
  0x1f   :  { %v37_v16 = vmax.f32 %v35_v11, %v36_v13  ;;  %v117_v11 = vsel %vm115_vm9, 0.4, %v113_v8  ;;  %v118_v13 = vsel %vm116_vm10, 0.4, %v114_v9 }
  0x20   :  { %v44_v17 = vmax.f32 %v42_v12, %v43_v14 }
  0x21   :  { %v45_v18 = vsub.f32 %v26_v0, %v37_v16 }
  0x22   :  { %v46_v19 = vsub.f32 %v27_v1, %v44_v17 }
  0x23   :  { %v47_v23 = vmul.f32 1.442695, %v45_v18  ;;  %v81_v27 = vsel %vm79_vm1, %v45_v18, 0.0 }
  0x24   :  { %v49_v24 = vmul.f32 1.442695, %v46_v19  ;;  %v82_v28 = vsel %vm80_vm2, %v46_v19, 0.0  ;;  %v83_v30 = vsel %vm30_vm0, %v81_v27, 0.0 }
  0x25   :  { %167 = vpow2.f32 %v47_v23  ;;  %v90_v33 = vsel %vm30_vm0, %v82_v28, 0.0  ;;  %v84_v37 = vrot.slane %v83_v30, 4 }
  0x26   :  { %169 = vpow2.f32 %v49_v24  ;;  %v91_v39 = vrot.slane %v90_v33, 4 }
  0x27   :  { %v85_v43 = vadd.f32 %v84_v37, %v83_v30 }
  0x28   :  { %v92_v45 = vadd.f32 %v91_v39, %v90_v33 }
  0x29   :  { %v86_v49 = vrot.slane %v85_v43, 2 }
  0x2a   :  { %v93_v51 = vrot.slane %v92_v45, 2 }
  0x2b   :  { %v87_v53 = vadd.f32 %v86_v49, %v85_v43 }
  0x2c   :  { %v94_v54 = vadd.f32 %v93_v51, %v92_v45 }
  0x2d   :  { %v88_v55 = vrot.slane %v87_v53, 1 }
  0x2e   :  { %v95_v56 = vrot.slane %v94_v54, 1 }
  0x2f   :  { %v168_v29 = vpop.eup %167  ;;  %v89_v57 = vadd.f32 %v88_v55, %v87_v53 }
  0x30   :  { %v170_v31 = vpop.eup %169  ;;  %v51_v32 = vsel %vm30_vm0, %v168_v29, 0.0  ;;  %v96_v59 = vadd.f32 %v95_v56, %v94_v54 }
  0x31   :  { %v52_v34 = vrot.slane %v51_v32, 4  ;;  %v58_v35 = vsel %vm30_vm0, %v170_v31, 0.0 }
  0x32   :  { %v59_v36 = vrot.slane %v58_v35, 4 }
  0x33   :  { %v53_v38 = vadd.f32 %v52_v34, %v51_v32 }
  0x34   :  { %v60_v40 = vadd.f32 %v59_v36, %v58_v35 }
  0x35   :  { %v54_v41 = vrot.slane %v53_v38, 2 }
  0x36   :  { %v61_v42 = vrot.slane %v60_v40, 2 }
  0x37   :  { %v55_v44 = vadd.f32 %v54_v41, %v53_v38 }
  0x38   :  { %v62_v46 = vadd.f32 %v61_v42, %v60_v40 }
  0x39   :  { %v56_v47 = vrot.slane %v55_v44, 1 }
  0x3a   :  { %v63_v48 = vrot.slane %v62_v46, 1 }
  0x3b   :  { %v57_v50 = vadd.f32 %v56_v47, %v55_v44 }
  0x3c   :  { %v64_v52 = vadd.f32 %v63_v48, %v62_v46 }
  0x3d   :  { %171 = vlog2.f32 %v57_v50 }
  0x3e   :  { %173 = vlog2.f32 %v64_v52 }
  0x47   :  { %v172_v58 = vpop.eup %171 }
  0x48   :  { %v174_v60 = vpop.eup %173  ;;  %v66_v61 = vmul.f32 0.6931472, %v172_v58 }
  0x49   :  { %v68_v62 = vmul.f32 0.6931472, %v174_v60 }
  0x4a   :  { %v97_v63 = vsub.f32 %v89_v57, %v66_v61 }
  0x4b   :  { %v98_v0 = vsub.f32 %v96_v59, %v68_v62 }
  0x4c   :  { %v99_v1 = vmul.f32 1.442695, %v97_v63  ;;  %v119_v16 = vmul.f32 %v117_v11, %v97_v63 }
  0x4d   :  { %v101_v2 = vmul.f32 1.442695, %v98_v0  ;;  %v120_v18 = vmul.f32 %v118_v13, %v98_v0 }
  0x4e   :  { %175 = vpow2.f32 %v99_v1 }
  0x4f   :  { %177 = vpow2.f32 %v101_v2 }
  0x58   :  { %v176_v10 = vpop.eup %175 }
  0x59   :  { %v178_v12 = vpop.eup %177  ;;  %v121_v14 = vsub.f32 1.0, %v176_v10 }
  0x5a   :  { %v122_v15 = vsub.f32 1.0, %v178_v12 }
  0x5b   :  { %v123_v17 = vmul.f32 %v121_v14, %v121_v14 }
  0x5c   :  { %v124_v19 = vmul.f32 %v122_v15, %v122_v15 }
  0x5d   :  { %v125_v20 = vsub.f32 0.0, %v123_v17 }
  0x5e   :  { %v126_v23 = vsub.f32 0.0, %v124_v19 }
  0x5f   :  { %v127_v24 = vmul.f32 %v125_v20, %v119_v16 }
  0x60   :  { %v128_v25 = vmul.f32 %v126_v23, %v120_v18 }
  0x61   :  { %v130_v26 = vsel %vm129_vm11, %v127_v24, 0.0 }
  0x62   :  { %v131_v21 = vsel %vm129_vm11, %v128_v25, 0.0 }
  0x63   :  { %v132_v27 = vadd.f32 %v131_v21, %v130_v26 }
  0x65   :  { %133 = vadd.xlane.f32.xlu0 %v132_v27 }
  0xf2   :  { %v134_v22 = vpop.xlane.xlu0 %133 }
  0xf3   :  { %v135_v28 = vrot.slane %v134_v22, 4 }
  0xf5   :  { %v136_v29 = vadd.f32 %v135_v28, %v134_v22 }
  0xf7   :  { %v137_v30 = vrot.slane %v136_v29, 2 }
  0xf9   :  { %v138_v31 = vadd.f32 %v137_v30, %v136_v29 }
  0xfb   :  { %v139_v32 = vrot.slane %v138_v31, 1 }
  0xfd   :  { %v140_v33 = vadd.f32 %v139_v32, %v138_v31 }
  0xff   :  { %160 = vpush %v140_v33 }
 0x130   :  { %s161_s27 = spop %160 }
 0x131   :  { %v142_v34 = vstv %s161_s27 }
 0x132   :  { %144 = vst.msk [vmem:[#allocation5] sm:$0x1] %vm143_vm12, %v142_v34 }
 0x133   :  { %212 = shalt.err (!%p209_p12)
}
 0x134   :  { %s213_s4 = scalar_lea.hbm %s299_s2, 16 }
 0x135   :  { %p214_p13 = scmp.ne.s32.totalorder %s299_s2, %s213_s4  ;;  %p217_p0 = scmp.lt.u32.totalorder %s213_s4, %s299_s2 }
 0x137   :  { %p219_p1 = pnand %p217_p0, %p214_p13 }
 0x139   :  { %222 = shalt.err (!%p219_p1)
}
 0x13a   :  { %154 = dma.vmem_to_hbm [thread:$0]  %s152_s26, 16, %s299_s2, [#allocation4]  }
 0x13b   :  { %225 = dma.done.wait [#allocation4], 16  }
 0x13c   :  { %226 = vsyncadd [#allocation4], 4294967280 }
 0x13d   :  { %158 = vsyncpa [#allocation3], 1 }
 0x13e   :  { %159 = vsyncpa [#allocation4], 1 }

</bundles_post_ra>
